<compile_context>
chip_gen: v6e
topology: v6e:2x2x1
jax: 0.10.0
libtpu: 0.0.40
codegen_flags: <defaults>
</compile_context>

<pallas_src>
import functools

import jax
import jax.numpy as jnp
from jax.experimental import pallas as pl
from jax.experimental.pallas import tpu as pltpu


_TILE_BYTES_TARGET = 4 * 1024 * 1024   # per x block; Pallas double-buffers it
_FUSED_BYTES_MAX = 4 * 1024 * 1024     # whole-problem-in-VMEM threshold
_VMEM_LIMIT = 32 * 1024 * 1024         # safe on v5e/v6e/v7x


# ---------------------------------------------------------------------------
# Fused single-step kernel: whole (N, C, HW) problem resident in VMEM.
# ---------------------------------------------------------------------------
def _se_kernel_fused(x_ref, w1_ref, b1_ref, w2_ref, b2_ref, o_ref):
    # x_ref: (N, C, HW); w1_ref: (C, Cmid); b1_ref: (1, Cmid)
    # w2_ref: (Cmid, C); b2_ref: (1, C);   o_ref: (N, 1, C)
    x = x_ref[...].astype(jnp.float32)
    pooled = jnp.mean(x, axis=-1)                               # (N, C) lane reduce
    h = jnp.dot(pooled, w1_ref[...].astype(jnp.float32),
                preferred_element_type=jnp.float32)             # (N, Cmid)
    h = jnp.maximum(h + b1_ref[...].astype(jnp.float32), 0.0)   # ReLU
    o = jnp.dot(h, w2_ref[...].astype(jnp.float32),
                preferred_element_type=jnp.float32)             # (N, C)
    o = o + b2_ref[...].astype(jnp.float32)
    o_ref[...] = jax.nn.sigmoid(o)[:, None, :].astype(o_ref.dtype)


# ---------------------------------------------------------------------------
# Tiled reduction kernel: grid = (N, HW_tiles), HW is the reduction axis.
# ---------------------------------------------------------------------------
def _se_kernel_tiled(x_ref, w1_ref, b1_ref, w2_ref, b2_ref, o_ref, acc_ref,
                     *, hw, hw_tile, num_hw_tiles):
    t = pl.program_id(1)

    @pl.when(t == 0)
    def _():
        acc_ref[...] = jnp.zeros_like(acc_ref)

    blk = x_ref[0].astype(jnp.float32)                          # (C, hw_tile)
    if hw % hw_tile != 0:
        # Ragged last tile: mask out-of-range HW columns before accumulating.
        col = t * hw_tile + jax.lax.broadcasted_iota(jnp.int32, blk.shape, 1)
        blk = jnp.where(col < hw, blk, 0.0)
    acc_ref[...] += jnp.sum(blk, axis=-1, keepdims=True)        # (C, 1) f32

    @pl.when(t == num_hw_tiles - 1)
    def _():
        pooled = acc_ref[...] * (1.0 / hw)                      # (C, 1)
        # (C,1) . (C,Cmid) contracting over C -> (1, Cmid); no transposes.
        h = jax.lax.dot_general(
            pooled, w1_ref[...].astype(jnp.float32),
            dimension_numbers=(((0,), (0,)), ((), ())),
            preferred_element_type=jnp.float32)                 # (1, Cmid)
        h = jnp.maximum(h + b1_ref[...].astype(jnp.float32), 0.0)
        o = jnp.dot(h, w2_ref[...].astype(jnp.float32),
                    preferred_element_type=jnp.float32)         # (1, C)
        o = o + b2_ref[...].astype(jnp.float32)
        o_ref[0] = jax.nn.sigmoid(o).astype(o_ref.dtype)


def _pick_hw_tile(c, hw, itemsize):
    """Largest HW tile (multiple of 128) keeping one x block near the target size."""
    max_cols = max(128, _TILE_BYTES_TARGET // max(1, c * itemsize))
    if hw <= max_cols:
        return hw                        # single tile: block dim == full dim
    return (max_cols // 128) * 128


def se_forward(x_nchw, w1, b1, w2, b2, *, force_tiled=False, hw_tile=None):
    """SE block forward.

    x_nchw : (N, C, H, W)
    w1     : (Cmid, C, 1, 1)  compress conv weight,  b1: (Cmid,)
    w2     : (C, Cmid, 1, 1)  excitation conv weight, b2: (C,)
    returns: (N, C, 1, 1)
    """
    N, C, H, W = x_nchw.shape
    Cmid = w1.shape[0]
    HW = H * W

    # NCHW -> (N, C, HW): a free reshape; no transpose of the big activation.
    x = x_nchw.reshape(N, C, HW)

    # 1x1 conv weights -> dense matmul weights (tiny; transpose is negligible).
    w1m = w1.reshape(Cmid, C).T          # (C, Cmid)
    b1m = b1.reshape(1, Cmid)
    w2m = w2.reshape(C, Cmid).T          # (Cmid, C)
    b2m = b2.reshape(1, C)

    itemsize = jnp.dtype(x_nchw.dtype).itemsize
    use_fused = (not force_tiled) and (N * C * HW * itemsize <= _FUSED_BYTES_MAX)

    if use_fused:
        out = pl.pallas_call(
            _se_kernel_fused,
            out_shape=jax.ShapeDtypeStruct((N, 1, C), x_nchw.dtype),
            compiler_params=pltpu.CompilerParams(
                vmem_limit_bytes=_VMEM_LIMIT),
        )(x, w1m, b1m, w2m, b2m)
    else:
        t_hw = hw_tile if hw_tile is not None else _pick_hw_tile(C, HW, itemsize)
        num_t = pl.cdiv(HW, t_hw)
        kernel = functools.partial(_se_kernel_tiled, hw=HW, hw_tile=t_hw,
                                   num_hw_tiles=num_t)
        out = pl.pallas_call(
            kernel,
            out_shape=jax.ShapeDtypeStruct((N, 1, C), x_nchw.dtype),
            grid_spec=pltpu.PrefetchScalarGridSpec(
                num_scalar_prefetch=0,
                grid=(N, num_t),                                  # HW last = reduction
                in_specs=[
                    pl.BlockSpec((1, C, t_hw), lambda n, t: (n, 0, t)),
                    pl.BlockSpec((C, Cmid), lambda n, t: (0, 0)),
                    pl.BlockSpec((1, Cmid), lambda n, t: (0, 0)),
                    pl.BlockSpec((Cmid, C), lambda n, t: (0, 0)),
                    pl.BlockSpec((1, C), lambda n, t: (0, 0)),
                ],
                out_specs=pl.BlockSpec((1, 1, C), lambda n, t: (n, 0, 0)),
                scratch_shapes=[pltpu.VMEM((C, 1), jnp.float32)],
            ),
            compiler_params=pltpu.CompilerParams(
                dimension_semantics=("parallel", "arbitrary"),
                vmem_limit_bytes=_VMEM_LIMIT),
        )(x, w1m, b1m, w2m, b2m)

    # (N, 1, C) -> (N, C, 1, 1): layout-preserving reshape.
    return out.reshape(N, C, 1, 1)


def _reference(x_nchw, w1, b1, w2, b2):
    # Pure-JAX reference with identical semantics.
    N, C, H, W = x_nchw.shape
    Cmid = w1.shape[0]
    s = jnp.mean(x_nchw.astype(jnp.float32), axis=(2, 3))          # (N, C)
    h = jnp.maximum(s @ w1.reshape(Cmid, C).T + b1, 0.0)           # (N, Cmid)
    o = jax.nn.sigmoid(h @ w2.reshape(C, Cmid).T + b2)             # (N, C)
    return o.reshape(N, C, 1, 1).astype(x_nchw.dtype)


if __name__ == "__main__":
    key = jax.random.PRNGKey(0)

    def make_case(k, N, C, H, W):
        Cmid = max(C // 16, 1)
        kx, k1, kb1, k2, kb2 = jax.random.split(k, 5)
        x = jax.random.normal(kx, (N, C, H, W), dtype=jnp.float32)
        bound1 = 1.0 / (C ** 0.5)
        w1 = jax.random.uniform(k1, (Cmid, C, 1, 1), jnp.float32, -bound1, bound1)
        b1 = jax.random.uniform(kb1, (Cmid,), jnp.float32, -bound1, bound1)
        bound2 = 1.0 / (Cmid ** 0.5)
        w2 = jax.random.uniform(k2, (C, Cmid, 1, 1), jnp.float32, -bound2, bound2)
        b2 = jax.random.uniform(kb2, (C,), jnp.float32, -bound2, bound2)
        return x, w1, b1, w2, b2

    keys = jax.random.split(key, 2)

    # Case 1: small problem -> fused single-step path (batched pooled matmuls).
    x, w1, b1, w2, b2 = make_case(keys[0], 2, 64, 16, 16)
    out = se_forward(x, w1, b1, w2, b2)
    jax.block_until_ready(out)
    ref = _reference(x, w1, b1, w2, b2)
    assert out.shape == (2, 64, 1, 1)
    assert jnp.allclose(out, ref, atol=1e-5, rtol=1e-5)

    # Case 2: forced tiled path, HW divisible by the tile (exercise accumulator).
    out2 = se_forward(x, w1, b1, w2, b2, force_tiled=True, hw_tile=128)
    jax.block_until_ready(out2)
    assert jnp.allclose(out2, ref, atol=1e-5, rtol=1e-5)

    # Case 3: forced tiled path with a ragged last HW tile (exercise masking).
    x3, w13, b13, w23, b23 = make_case(keys[1], 2, 64, 13, 13)      # HW = 169
    out3 = se_forward(x3, w13, b13, w23, b23, force_tiled=True, hw_tile=128)
    jax.block_until_ready(out3)
    ref3 = _reference(x3, w13, b13, w23, b23)
    assert jnp.allclose(out3, ref3, atol=1e-5, rtol=1e-5)

    print("KERNEL_OK")
</pallas_src>

<mosaic_0001>
module attributes {stable_mosaic.version = 11 : i64} {
  func.func @_se_kernel_fused(%arg0: memref<2x64x256xf32, #tpu.memory_space<vmem>>, %arg1: memref<64x4xf32, #tpu.memory_space<vmem>>, %arg2: memref<1x4xf32, #tpu.memory_space<vmem>>, %arg3: memref<4x64xf32, #tpu.memory_space<vmem>>, %arg4: memref<1x64xf32, #tpu.memory_space<vmem>>, %arg5: memref<2x1x64xf32, #tpu.memory_space<vmem>>) attributes {dimension_semantics = [], scalar_prefetch = 0 : i64, scratch_operands = 0 : i64, tpu.core_type = #tpu.core_type<tc>} {
    %c0 = arith.constant 0 : index
    %c0_0 = arith.constant 0 : index
    %c0_1 = arith.constant 0 : index
    %0 = vector.load %arg0[%c0, %c0_0, %c0_1] : memref<2x64x256xf32, #tpu.memory_space<vmem>>, vector<2x64x256xf32>
    %cst = arith.constant dense<0.000000e+00> : vector<2x64xf32>
    %1 = vector.multi_reduction <add>, %0, %cst [2] : vector<2x64x256xf32> to vector<2x64xf32>
    %cst_2 = arith.constant 2.560000e+02 : f32
    %2 = vector.broadcast %cst_2 : f32 to vector<2x64xf32>
    %3 = arith.divf %1, %2 : vector<2x64xf32>
    %c0_3 = arith.constant 0 : index
    %c0_4 = arith.constant 0 : index
    %4 = vector.load %arg1[%c0_3, %c0_4] : memref<64x4xf32, #tpu.memory_space<vmem>>, vector<64x4xf32>
    %cst_5 = arith.constant dense<0.000000e+00> : vector<2x4xf32>
    %5 = tpu.matmul %3, %4, %cst_5 {dimension_numbers = #tpu.dot_dimension_numbers<[1], [0], [0], [1], [0, 0, 1, 1], [], []>} : vector<2x64xf32>, vector<64x4xf32>, vector<2x4xf32> -> vector<2x4xf32>
    %c0_6 = arith.constant 0 : index
    %c0_7 = arith.constant 0 : index
    %6 = vector.load %arg2[%c0_6, %c0_7] : memref<1x4xf32, #tpu.memory_space<vmem>>, vector<1x4xf32>
    %7 = vector.broadcast %6 : vector<1x4xf32> to vector<2x4xf32>
    %8 = arith.addf %5, %7 : vector<2x4xf32>
    %cst_8 = arith.constant 0.000000e+00 : f32
    %9 = vector.broadcast %cst_8 : f32 to vector<2x4xf32>
    %10 = arith.maximumf %8, %9 : vector<2x4xf32>
    %c0_9 = arith.constant 0 : index
    %c0_10 = arith.constant 0 : index
    %11 = vector.load %arg3[%c0_9, %c0_10] : memref<4x64xf32, #tpu.memory_space<vmem>>, vector<4x64xf32>
    %cst_11 = arith.constant dense<0.000000e+00> : vector<2x64xf32>
    %12 = tpu.matmul %10, %11, %cst_11 {dimension_numbers = #tpu.dot_dimension_numbers<[1], [0], [0], [1], [0, 0, 1, 1], [], []>} : vector<2x4xf32>, vector<4x64xf32>, vector<2x64xf32> -> vector<2x64xf32>
    %c0_12 = arith.constant 0 : index
    %c0_13 = arith.constant 0 : index
    %13 = vector.load %arg4[%c0_12, %c0_13] : memref<1x64xf32, #tpu.memory_space<vmem>>, vector<1x64xf32>
    %14 = vector.broadcast %13 : vector<1x64xf32> to vector<2x64xf32>
    %15 = arith.addf %12, %14 : vector<2x64xf32>
    %16 = arith.negf %15 : vector<2x64xf32>
    %17 = math.exp %16 : vector<2x64xf32>
    %cst_14 = arith.constant 1.000000e+00 : f32
    %18 = vector.broadcast %cst_14 : f32 to vector<2x64xf32>
    %19 = arith.addf %18, %17 : vector<2x64xf32>
    %20 = arith.divf %18, %19 : vector<2x64xf32>
    %21 = vector.shape_cast %20 : vector<2x64xf32> to vector<2x1x64xf32>
    %c0_15 = arith.constant 0 : index
    %c0_16 = arith.constant 0 : index
    %c0_17 = arith.constant 0 : index
    %22 = vector.load %arg5[%c0_15, %c0_16, %c0_17] : memref<2x1x64xf32, #tpu.memory_space<vmem>>, vector<2x1x64xf32>
    tpu.vector_store %arg5[%c0_15, %c0_16, %c0_17], %21 {strides = array<i32>} : memref<2x1x64xf32, #tpu.memory_space<vmem>>, vector<2x1x64xf32>,
    return
  }
}

</mosaic_0001>

<bundles_post_ra>
// kernel: tpu_custom_call.1
= control target key start
LH: loop header
LB: loop body
LE: loop exit
PB: predicated region body
PF: predicated region fallthrough
CT: control target
= control target key end

     0   :  { %10 = vsyncpa [#allocation3], 0  ;;  %s670_s0 = inlined_call_operand.hbm [shape: f32[2,64,256], index: 0, kind: input, shape index: {}]   ;;  %s671_s1 = inlined_call_operand.vmem [shape: f32[64,4], index: 1, kind: input, shape index: {}]   ;;  %s672_s2 = inlined_call_operand.vmem [shape: f32[1,4], index: 2, kind: input, shape index: {}]   ;;  %s673_s3 = inlined_call_operand.vmem [shape: f32[4,64], index: 3, kind: input, shape index: {}]   ;;  %s674_s4 = inlined_call_operand.vmem [shape: f32[1,64], index: 4, kind: input, shape index: {}]   ;;  %s675_s5 = inlined_call_operand.hbm [shape: f32[2,1,64], index: 5, kind: output, shape index: {}]  }
   0x1   :  { %11 = vsyncpa [#allocation4], 0  ;;  %s567_s18 = smov [#allocation2]  }
   0x2   :  { %s17_s19 = sshll.u32 %s567_s18, 4  ;;  %s18_s19 = int_to_ptr.vmem [resolvable:$true] %s17_s19 }
   0x3   :  { %s531_s20 = scalar_lea.vmem %s18_s19, 4096  ;;  %p536_p1 = scmp.lt.s32.totalorder %s18_s19, %s18_s19 }
   0x4   :  { %p532_p0 = scmp.ne.s32.totalorder %s18_s19, %s531_s20  ;;  %p537_p2 = scmp.lt.s32.totalorder %s531_s20, %s531_s20 }
   0x6   :  { %p538_p3 = por %p537_p2, %p536_p1 }
   0x8   :  { %p539_p4 = pnand %p538_p3, %p532_p0 }
   0xa   :  { %542 = shalt.err (!%p539_p4)
}
   0xb   :  { %s568_s21 = smov 256   ;;  %s569_s22 = smov 16  }
   0xc   :  { %23 = dma.hbm_to_vmem [thread:$0]  %s670_s0, 4096, %s18_s19, [#allocation3], %s568_s21, %s568_s21, %s569_s22  }
   0xd   :  { %563 = dma.done.wait [#allocation3], 4096  }
   0xe   :  { %564 = vsyncadd [#allocation3], 4294963200  ;;  %v51_v0 = vld [vmem:[#allocation2 + $0x80] sm:$0xff]  ;;  %v52_v1 = vld [vmem:[#allocation2 + $0x88] sm:$0xff]  ;;  %v570_v48 = vmov 0.0   ;;  %vm571_vm0 = vmmov 0   ;;  %v163_v61 = vlaneseq }
   0xf   :  { %v35_v2 = vld [vmem:[#allocation2] sm:$0xff]  ;;  %v91_v3 = vadd.f32 %v52_v1, %v51_v0  ;;  %v36_v4 = vld [vmem:[#allocation2 + $0x8] sm:$0xff]  ;;  %v53_v5 = vld [vmem:[#allocation2 + $0x90] sm:$0xff]  ;;  %487 = vmatprep.subr.mxu0 %v570_v48  ;;  %506 = vmatprep.subr.mxu1 %v570_v48  ;;  %vm174_vm1 = vcmask 130112   ;;  %vm181_vm2 = vcmask 195712   ;;  %vm188_vm3 = vcmask 261312  }
  0x10   :  { %v54_v6 = vld [vmem:[#allocation2 + $0x98] sm:$0xff]  ;;  %v67_v7 = vadd.f32 %v36_v4, %v35_v2  ;;  %v37_v8 = vld [vmem:[#allocation2 + $0x10] sm:$0xff]  ;;  %v55_v12 = vld [vmem:[#allocation2 + $0xa0] sm:$0xff]  ;;  %503 = vmatprep.mubr.msk.f32.mxu0 %vm571_vm0, %v570_v48  ;;  %508 = vmatprep.mubr.msk.f32.mxu1 %vm571_vm0, %v570_v48  ;;  %v164_v0 = vand.u32 127, %v163_v61  ;;  %v633_v2 = vshrl.u32 %v163_v61, 7  ;;  %vm195_vm4 = vcmask 326912  }
  0x11   :  { %v38_v9 = vld [vmem:[#allocation2 + $0x18] sm:$0xff]  ;;  %92 = vadd.xlane.f32.xlu1 %v91_v3  ;;  %v94_v10 = vadd.f32 %v54_v6, %v53_v5  ;;  %v56_v13 = vld [vmem:[#allocation2 + $0xa8] sm:$0xff]  ;;  %v39_v14 = vld [vmem:[#allocation2 + $0x20] sm:$0xff]  ;;  %vm202_vm5 = vcmask 392512   ;;  %vm209_vm6 = vcmask 458112   ;;  %vm216_vm7 = vcmask 523712  }
  0x12   :  { %68 = vadd.xlane.f32.xlu0 %v67_v7  ;;  %v70_v11 = vadd.f32 %v38_v9, %v37_v8  ;;  %v40_v15 = vld [vmem:[#allocation2 + $0x28] sm:$0xff]  ;;  %v97_v16 = vadd.f32 %v56_v13, %v55_v12  ;;  %v57_v18 = vld [vmem:[#allocation2 + $0xb0] sm:$0xff]  ;;  %v58_v19 = vld [vmem:[#allocation2 + $0xb8] sm:$0xff]  ;;  %v169_v4 = vadd.s32 4294967288, %v164_v0  ;;  %v176_v5 = vadd.s32 4294967280, %v164_v0 }
  0x13   :  { %v73_v17 = vadd.f32 %v40_v15, %v39_v14  ;;  %v41_v20 = vld [vmem:[#allocation2 + $0x30] sm:$0xff]  ;;  %v42_v21 = vld [vmem:[#allocation2 + $0x38] sm:$0xff]  ;;  %v100_v22 = vadd.f32 %v58_v19, %v57_v18  ;;  %v59_v24 = vld [vmem:[#allocation2 + $0xc0] sm:$0xff]  ;;  %v183_v6 = vadd.s32 4294967272, %v164_v0  ;;  %v190_v7 = vadd.s32 4294967264, %v164_v0 }
  0x14   :  { %v76_v23 = vadd.f32 %v42_v21, %v41_v20  ;;  %v60_v25 = vld [vmem:[#allocation2 + $0xc8] sm:$0xff]  ;;  %v43_v26 = vld [vmem:[#allocation2 + $0x40] sm:$0xff]  ;;  %v61_v30 = vld [vmem:[#allocation2 + $0xd0] sm:$0xff]  ;;  %v197_v9 = vadd.s32 4294967256, %v164_v0  ;;  %v172_v12 = vsub.s32 %v169_v4, %v633_v2  ;;  %v179_v13 = vsub.s32 %v176_v5, %v633_v2 }
  0x15   :  { %95 = vadd.xlane.f32.xlu1 %v94_v10  ;;  %v44_v27 = vld [vmem:[#allocation2 + $0x48] sm:$0xff]  ;;  %v103_v28 = vadd.f32 %v60_v25, %v59_v24  ;;  %v62_v31 = vld [vmem:[#allocation2 + $0xd8] sm:$0xff]  ;;  %v45_v32 = vld [vmem:[#allocation2 + $0x50] sm:$0xff]  ;;  %v167_v10 = vsub.s32 %v164_v0, %v633_v2  ;;  %v204_v14 = vadd.s32 4294967248, %v164_v0  ;;  %vm257_vm8 = vcmask 1041409  }
  0x16   :  { %71 = vadd.xlane.f32.xlu0 %v70_v11  ;;  %v79_v29 = vadd.f32 %v44_v27, %v43_v26  ;;  %v46_v33 = vld [vmem:[#allocation2 + $0x58] sm:$0xff]  ;;  %v106_v34 = vadd.f32 %v62_v31, %v61_v30  ;;  %v63_v36 = vld [vmem:[#allocation2 + $0xe0] sm:$0xff]  ;;  %v64_v37 = vld [vmem:[#allocation2 + $0xe8] sm:$0xff]  ;;  %v200_v20 = vsub.s32 %v197_v9, %v633_v2  ;;  %vm259_vm9 = vcmask 523264  }
  0x17   :  { %v82_v35 = vadd.f32 %v46_v33, %v45_v32  ;;  %v47_v38 = vld [vmem:[#allocation2 + $0x60] sm:$0xff]  ;;  %v48_v39 = vld [vmem:[#allocation2 + $0x68] sm:$0xff]  ;;  %v109_v40 = vadd.f32 %v64_v37, %v63_v36  ;;  %v65_v42 = vld [vmem:[#allocation2 + $0xf0] sm:$0xff]  ;;  %v211_v33 = vadd.s32 4294967240, %v164_v0  ;;  %vm345_vm10 = vcmask 1043456  }
  0x18   :  { %v85_v41 = vadd.f32 %v48_v39, %v47_v38  ;;  %v66_v43 = vld [vmem:[#allocation2 + $0xf8] sm:$0xff]  ;;  %v49_v44 = vld [vmem:[#allocation2 + $0x70] sm:$0xff]  ;;  %v137_v51 = vld [vmem:[%s671_s1 + $0x28] sm:$0xff]  ;;  %vm341_vm11 = vcmask 31744   ;;  %vm450_vm12 = vcmask 516096  }
  0x19   :  { %98 = vadd.xlane.f32.xlu1 %v97_v16  ;;  %v50_v45 = vld [vmem:[#allocation2 + $0x78] sm:$0xff]  ;;  %v112_v46 = vadd.f32 %v66_v43, %v65_v42  ;;  %v138_v50 = vld [vmem:[%s671_s1 + $0x30] sm:$0xff]  ;;  %v136_v52 = vld [vmem:[%s671_s1 + $0x20] sm:$0xff]  ;;  %v186_v16 = vsub.s32 %v183_v6, %v633_v2 }
  0x1a   :  { %74 = vadd.xlane.f32.xlu0 %v73_v17  ;;  %v88_v47 = vadd.f32 %v50_v45, %v49_v44  ;;  %v139_v49 = vld [vmem:[%s671_s1 + $0x38] sm:$0xff]  ;;  %v134_v54 = vld [vmem:[%s671_s1 + $0x10] sm:$0xff]  ;;  %v133_v55 = vld [vmem:[%s671_s1 + $0x8] sm:$0xff]  ;;  %v193_v17 = vsub.s32 %v190_v7, %v633_v2 }
  0x1b   :  { %488 = vmatpush3.msra.mxu0 %v139_v49  ;;  %v135_v53 = vld [vmem:[%s671_s1 + $0x18] sm:$0xff]  ;;  %v132_v56 = vld [vmem:[%s671_s1] sm:$0xff] }
  0x1c   :  { %489 = vmatprep.subr.mxu0 %v570_v48 }
  0x1d   :  { %101 = vadd.xlane.f32.xlu1 %v100_v22  ;;  %490 = vmatpush3.msra.mxu0 %v138_v50  ;;  %v214_v50 = vsub.s32 %v211_v33, %v633_v2 }
  0x1e   :  { %77 = vadd.xlane.f32.xlu0 %v76_v23  ;;  %491 = vmatprep.subr.mxu0 %v570_v48 }
  0x1f   :  { %492 = vmatpush3.msra.mxu0 %v137_v51 }
  0x20   :  { %493 = vmatprep.subr.mxu0 %v570_v48 }
  0x21   :  { %104 = vadd.xlane.f32.xlu1 %v103_v28  ;;  %494 = vmatpush3.msra.mxu0 %v136_v52 }
  0x22   :  { %80 = vadd.xlane.f32.xlu0 %v79_v29  ;;  %495 = vmatprep.subr.mxu0 %v570_v48  ;;  %v207_v29 = vsub.s32 %v204_v14, %v633_v2 }
  0x23   :  { %496 = vmatpush3.msra.mxu0 %v135_v53 }
  0x24   :  { %497 = vmatprep.subr.mxu0 %v570_v48 }
  0x25   :  { %107 = vadd.xlane.f32.xlu1 %v106_v34  ;;  %498 = vmatpush3.msra.mxu0 %v134_v54 }
  0x26   :  { %83 = vadd.xlane.f32.xlu0 %v82_v35  ;;  %499 = vmatprep.subr.mxu0 %v570_v48 }
  0x27   :  { %500 = vmatpush3.msra.mxu0 %v133_v55 }
  0x28   :  { %501 = vmatprep.subr.mxu0 %v570_v48 }
  0x29   :  { %110 = vadd.xlane.f32.xlu1 %v109_v40  ;;  %502 = vmatpush3.msra.mxu0 %v132_v56 }
  0x2a   :  { %86 = vadd.xlane.f32.xlu0 %v85_v41 }
  0x2d   :  { %113 = vadd.xlane.f32.xlu1 %v112_v46 }
  0x2e   :  { %89 = vadd.xlane.f32.xlu0 %v88_v47 }
  0x9a   :  { %v93_v57 = vpop.xlane.xlu1 %92 }
  0x9b   :  { %v69_v58 = vpop.xlane.xlu0 %68  ;;  %v124_v22 = vmul.f32 0.00390625, %v93_v57 }
  0x9c   :  { %v116_v26 = vmul.f32 0.00390625, %v69_v58 }
  0x9d   :  { %v221_v38 = vrot.slane %v124_v22, %v167_v10 }
  0x9e   :  { %v96_v59 = vpop.xlane.xlu1 %95  ;;  %v168_v43 = vrot.slane %v116_v26, %v167_v10 }
  0x9f   :  { %v72_v60 = vpop.xlane.xlu0 %71  ;;  %v125_v15 = vmul.f32 0.00390625, %v96_v59 }
  0xa0   :  { %v117_v18 = vmul.f32 0.00390625, %v72_v60 }
  0xa1   :  { %v225_v30 = vrot.slane %v125_v15, %v172_v12 }
  0xa2   :  { %v99_v62 = vpop.xlane.xlu1 %98  ;;  %v173_v34 = vrot.slane %v117_v18, %v172_v12  ;;  %v470_v12 = vld [vmem:[%s672_s2] ss:$0 sm:$0xff]  ;;  %s573_s2 = smov [#allocation5]  }
  0xa3   :  { %v75_v63 = vpop.xlane.xlu0 %74  ;;  %v126_v19 = vmul.f32 0.00390625, %v99_v62  ;;  %v226_v47 = vsel %vm174_vm1, %v225_v30, %v221_v38 }
  0xa4   :  { %v118_v23 = vmul.f32 0.00390625, %v75_v63  ;;  %v175_v51 = vsel %vm174_vm1, %v173_v34, %v168_v43 }
  0xa5   :  { %v230_v35 = vrot.slane %v126_v19, %v179_v13 }
  0xa6   :  { %v102_v1 = vpop.xlane.xlu1 %101  ;;  %v180_v39 = vrot.slane %v118_v23, %v179_v13 }
  0xa7   :  { %v78_v3 = vpop.xlane.xlu0 %77  ;;  %v127_v24 = vmul.f32 0.00390625, %v102_v1  ;;  %v231_v52 = vsel %vm181_vm2, %v230_v35, %v226_v47 }
  0xa8   :  { %v119_v27 = vmul.f32 0.00390625, %v78_v3  ;;  %v182_v56 = vsel %vm181_vm2, %v180_v39, %v175_v51 }
  0xa9   :  { %v235_v40 = vrot.slane %v127_v24, %v186_v16  ;;  %v572_v24 = vmov 1966171168  }
  0xaa   :  { %v105_v8 = vpop.xlane.xlu1 %104  ;;  %v187_v44 = vrot.slane %v119_v27, %v186_v16 }
  0xab   :  { %v81_v11 = vpop.xlane.xlu0 %80  ;;  %v128_v28 = vmul.f32 0.00390625, %v105_v8  ;;  %v236_v57 = vsel %vm188_vm3, %v235_v40, %v231_v52 }
  0xac   :  { %v120_v31 = vmul.f32 0.00390625, %v81_v11  ;;  %v189_v61 = vsel %vm188_vm3, %v187_v44, %v182_v56  ;;  %v333_v11 = vld [vmem:[%s673_s3] sm:$0xf]  ;;  %s458_s3 = sshll.u32 %s573_s2, 4  ;;  %s459_s3 = int_to_ptr.vmem [resolvable:$true] %s458_s3 }
  0xad   :  { %v240_v45 = vrot.slane %v128_v28, %v193_v17  ;;  %507 = vmatpush3.msk.msra.mxu1 %vm345_vm10, %v333_v11  ;;  %p548_p6 = scmp.lt.s32.totalorder %s459_s3, %s459_s3 }
  0xae   :  { %v108_v21 = vpop.xlane.xlu1 %107  ;;  %v194_v48 = vrot.slane %v120_v31, %v193_v17  ;;  %v472_v17 = vld [vmem:[%s674_s4] ss:$0 sm:$0xff]  ;;  %s543_s4 = scalar_lea.vmem %s459_s3, 32 }
  0xaf   :  { %v84_v25 = vpop.xlane.xlu0 %83  ;;  %v129_v32 = vmul.f32 0.00390625, %v108_v21  ;;  %v241_v62 = vsel %vm195_vm4, %v240_v45, %v236_v57  ;;  %p544_p5 = scmp.ne.s32.totalorder %s459_s3, %s543_s4  ;;  %p549_p7 = scmp.lt.s32.totalorder %s543_s4, %s543_s4 }
  0xb0   :  { %v121_v36 = vmul.f32 0.00390625, %v84_v25  ;;  %v196_v0 = vsel %vm195_vm4, %v194_v48, %v189_v61  ;;  %v427_v25 = vunpack.c.l.s4 %v572_v24 }
  0xb1   :  { %v245_v49 = vrot.slane %v129_v32, %v200_v20  ;;  %p550_p8 = por %p549_p7, %p548_p6 }
  0xb2   :  { %v111_v37 = vpop.xlane.xlu1 %110  ;;  %v201_v53 = vrot.slane %v121_v36, %v200_v20  ;;  %v428_v26 = vunpack.c.0.s8 %v427_v25 }
  0xb3   :  { %v130_v41 = vmul.f32 0.00390625, %v111_v37  ;;  %v87_v42 = vpop.xlane.xlu0 %86  ;;  %v246_v1 = vsel %vm202_vm5, %v245_v49, %v241_v62  ;;  %p551_p9 = pnand %p550_p8, %p544_p5 }
  0xb4   :  { %v122_v46 = vmul.f32 0.00390625, %v87_v42  ;;  %v203_v4 = vsel %vm202_vm5, %v201_v53, %v196_v0  ;;  %v431_v27 = vsub.s32 %v428_v26, %v633_v2 }
  0xb5   :  { %v250_v54 = vrot.slane %v130_v41, %v207_v29 }
  0xb6   :  { %v114_v55 = vpop.xlane.xlu1 %113  ;;  %v208_v58 = vrot.slane %v122_v46, %v207_v29 }
  0xb7   :  { %v131_v59 = vmul.f32 0.00390625, %v114_v55  ;;  %v90_v60 = vpop.xlane.xlu0 %89  ;;  %v251_v5 = vsel %vm209_vm6, %v250_v54, %v246_v1 }
  0xb8   :  { %v123_v63 = vmul.f32 0.00390625, %v90_v60  ;;  %v210_v7 = vsel %vm209_vm6, %v208_v58, %v203_v4 }
  0xb9   :  { %v255_v3 = vrot.slane %v131_v59, %v214_v50 }
  0xba   :  { %v215_v6 = vrot.slane %v123_v63, %v214_v50 }
  0xbb   :  { %v256_v8 = vsel %vm216_vm7, %v255_v3, %v251_v5 }
  0xbc   :  { %v217_v9 = vsel %vm216_vm7, %v215_v6, %v210_v7 }
  0xbd   :  { %v258_v10 = vsel %vm257_vm8, %v256_v8, %v217_v9 }
  0xbe   :  { %504 = vmatmul.mubr.msk.f32.vlgmr.msra.gmra.mxu0 %vm259_vm9, %v258_v10 }
 0x17e   :  { %v328_v13 = vpop.f32.mrf.mxu0 }
 0x17f   :  { %v329_v14 = vadd.f32 %v470_v12, %v328_v13 }
 0x180   :  { %v505_v15 = vpop.f32.mrf.mxu0 }
 0x181   :  { %v332_v16 = vmax.f32 %v329_v14, 0.0 }
 0x183   :  { %509 = vmatmul.mubr.msk.f32.vlgmr.msra.gmra.mxu1 %vm341_vm11, %v332_v16 }
 0x243   :  { %v415_v18 = vpop.f32.mrf.mxu1 }
 0x244   :  { %v416_v19 = vadd.f32 %v472_v17, %v415_v18 }
 0x245   :  { %v510_v20 = vpop.f32.mrf.mxu1 }
 0x246   :  { %v475_v21 = vmul.f32 -1.442695, %v416_v19 }
 0x248   :  { %519 = vpow2.f32 %v475_v21 }
 0x255   :  { %v520_v22 = vpop.eup %519 }
 0x256   :  { %v422_v23 = vadd.f32 1.0, %v520_v22 }
 0x258   :  { %521 = vrcp.f32 %v422_v23 }
 0x265   :  { %v522_v28 = vpop.eup %521 }
 0x266   :  { %v432_v29 = vrot.slane %v522_v28, %v431_v27 }
 0x268   :  { %v433_v30 = vcombine.high %v432_v29, %v432_v29  ;;  %v440_v31 = vrot.slane %v432_v29, %v431_v27 }
 0x26a   :  { %v447_v32 = vrot.slane %v433_v30, %v431_v27  ;;  %451 = vst.msk [vmem:[#allocation5] sm:$0x1] %vm450_vm12, %v440_v31 }
 0x26c   :  { %452 = vst.msk [vmem:[#allocation5 + $0x1] sm:$0x1] %vm450_vm12, %v447_v32 }
 0x26d   :  { %554 = shalt.err (!%p551_p9)
}
 0x26e   :  { %s574_s20 = smov 1  }
 0x26f   :  { %464 = dma.vmem_to_hbm [thread:$0]  %s459_s3, 32, %s675_s5, [#allocation4], %s569_s22, %s569_s22, %s574_s20  }
 0x270   :  { %565 = dma.done.wait [#allocation4], 32  }
 0x271   :  { %566 = vsyncadd [#allocation4], 4294967264 }
 0x272   :  { %468 = vsyncpa [#allocation3], 1 }
 0x273   :  { %469 = vsyncpa [#allocation4], 1 }

</bundles_post_ra>
